<compile_context>
chip_gen: v7x
topology: tpu7x:2x2x1
jax: 0.10.0
libtpu: 0.0.40
codegen_flags: <defaults>
</compile_context>

<pallas_src>
import functools
import math

import jax
import jax.numpy as jnp
from jax.experimental import pallas as pl
from jax.experimental.pallas import tpu as pltpu

EPS = 1e-5


def _resblock_kernel(x_ref, mup_ref, mdn_ref,
                     m1_ref, g1_ref, b1_ref,
                     m2_ref, g2_ref, b2_ref,
                     ppt_ref, out_ref, *, inv_count):
    """Fused ResBlock forward, fully VMEM resident.

    x_ref    : (N*H, W*Cp)      activation, lane-dense (W*Cp multiple of 128)
    mup/mdn  : (N*H, 1)         0/1 masks zeroing the h==0 / h==H-1 rolled rows
    m*_ref   : (3, W*Cp, W*Cp)  block-Toeplitz conv weights (kx + W padding folded in)
    g*_ref   : (1, W*Cp)        BN gamma tiled over w (0 on padded channels)
    b*_ref   : (1, W*Cp)        BN beta tiled over w  (0 on padded channels)
    ppt_ref  : (W*Cp, W*Cp)     kron(ones(W,W), eye(Cp)): channel collapse + broadcast
    out_ref  : (N*H, W*Cp)
    """
    NH, WC = x_ref.shape
    x = x_ref[...]                      # read once; reused for the residual add
    mask_up = mup_ref[...]              # (NH, 1)
    mask_dn = mdn_ref[...]              # (NH, 1)
    sel = jax.lax.broadcasted_iota(jnp.int32, (2, 1), 0)   # stacks stats w/o concat

    def conv_bn(inp, m_ref, g_ref, b_ref):
        # 3x3 conv = 3 MXU matmuls (one per ky) against block-Toeplitz weights; the
        # H shifts are XLU sublane rotations + boundary masks (no unaligned slices).
        acc = jnp.dot(inp, m_ref[1], preferred_element_type=jnp.float32)
        up = pltpu.roll(inp, shift=1, axis=0) * mask_up          # row h-1
        acc = acc + jnp.dot(up, m_ref[0], preferred_element_type=jnp.float32)
        dn = pltpu.roll(inp, shift=NH - 1, axis=0) * mask_dn     # row h+1
        acc = acc + jnp.dot(dn, m_ref[2], preferred_element_type=jnp.float32)

        # Training-mode BatchNorm folded into one per-channel scale/shift.
        # One fused (2, WC) x (WC, WC) stats matmul: collapse per-(w,c) sums to
        # per-channel and re-broadcast across w in a single MXU pass.
        row_sum = jnp.sum(acc, axis=0, keepdims=True)            # (1, WC)
        row_sq = jnp.sum(acc * acc, axis=0, keepdims=True)       # (1, WC)
        stats_in = jnp.where(sel == 0, row_sum, row_sq)          # (2, WC)
        stats = jnp.dot(stats_in, ppt_ref[...],
                        preferred_element_type=jnp.float32) * inv_count
        mean = stats[0:1, :]
        var = stats[1:2, :] - mean * mean
        scale = g_ref[...] * jax.lax.rsqrt(var + EPS)            # (1, WC)
        shift = b_ref[...] - mean * scale                        # (1, WC)
        return acc * scale + shift

    # Stage 1: conv -> BN -> ReLU (intermediate never leaves VMEM).
    h = jnp.maximum(conv_bn(x, m1_ref, g1_ref, b1_ref), 0.0)
    # Stage 2: conv -> BN -> add residual x -> ReLU.
    y = conv_bn(h, m2_ref, g2_ref, b2_ref) + x
    out_ref[...] = jnp.maximum(y, 0.0).astype(out_ref.dtype)


def _toeplitz_conv_weights(w_hwio, width):
    """(3, 3, Cin, Cout) HWIO weights -> (3, width*Cin, width*Cout) block-Toeplitz.

    M[ky][wi*Cin+ci, wo*Cout+co] = w[ky, kx, ci, co] with wi = wo + kx - 1; the
    SAME-padding boundary along W is encoded as absent (zero) blocks.
    """
    mats = []
    for ky in range(3):
        m = sum(jnp.kron(jnp.eye(width, k=1 - kx, dtype=w_hwio.dtype), w_hwio[ky, kx])
                for kx in range(3))
        mats.append(m)
    return jnp.stack(mats)


def res_block_forward(x_nchw, params):
    """ResBlock forward. x_nchw: (N, C, H, W) float32, like the PyTorch module."""
    N, C, H, W = x_nchw.shape
    # Pad channels so the minor (lane) axis W*Cp is a multiple of 128.
    step = 128 // math.gcd(W, 128)
    Cp = max(C, ((C + step - 1) // step) * step)
    pad_c = Cp - C
    WC = W * Cp

    # NCHW -> lane-dense (N*H, W*Cp). Wrapper-side layout plumbing only.
    x = jnp.transpose(x_nchw, (0, 2, 3, 1))                       # NHWC
    x = jnp.pad(x, ((0, 0), (0, 0), (0, 0), (0, pad_c)))
    x = x.reshape(N * H, WC).astype(jnp.float32)

    pad_w = lambda w: jnp.pad(w, ((0, 0), (0, 0), (0, pad_c), (0, pad_c)))
    m1 = _toeplitz_conv_weights(pad_w(params["w1"]), W)
    m2 = _toeplitz_conv_weights(pad_w(params["w2"]), W)
    ppt = jnp.kron(jnp.ones((W, W), jnp.float32), jnp.eye(Cp, dtype=jnp.float32))
    tile = lambda v: jnp.tile(jnp.pad(v, (0, pad_c)), W).reshape(1, WC)
    # Conv biases params["b1"] / params["b2"] are intentionally NOT passed: training-mode
    # BN subtracts the per-channel mean, which cancels them exactly.

    # H-boundary masks for the sublane rolls (0 on rows with h==0 / h==H-1).
    h_idx = jnp.arange(N * H, dtype=jnp.int32) % H
    mask_up = (h_idx != 0).astype(jnp.float32).reshape(N * H, 1)
    mask_dn = (h_idx != H - 1).astype(jnp.float32).reshape(N * H, 1)

    operands = (x, mask_up, mask_dn,
                m1, tile(params["g1"]), tile(params["beta1"]),
                m2, tile(params["g2"]), tile(params["beta2"]), ppt)

    # Derive VMEM limit from actual buffer bytes (+ headroom for f32 intermediates),
    # floored at 16 MiB and capped at 48 MiB so it is safe on v5e/v6e/v7x.
    buf_bytes = sum(int(a.size) * a.dtype.itemsize for a in operands)
    buf_bytes += 8 * int(x.size) * 4
    vmem_limit = int(min(max(4 * buf_bytes, 16 * 1024 * 1024), 48 * 1024 * 1024))

    vmem = lambda: pl.BlockSpec(memory_space=pltpu.MemorySpace.VMEM)
    out = pl.pallas_call(
        functools.partial(_resblock_kernel, inv_count=1.0 / float(N * H * W)),
        out_shape=jax.ShapeDtypeStruct((N * H, WC), x_nchw.dtype),
        in_specs=[vmem() for _ in operands],
        out_specs=vmem(),
        compiler_params=pltpu.CompilerParams(vmem_limit_bytes=vmem_limit),
    )(*operands)

    out = out.reshape(N, H, W, Cp)[..., :C]
    return jnp.transpose(out, (0, 3, 1, 2))                       # back to NCHW


# ------------------------- pure-JAX reference (for checking) -------------------------
def _ref_stage(x, w, b, gamma, beta, residual):
    y = jax.lax.conv_general_dilated(
        x, w, window_strides=(1, 1), padding="SAME",
        dimension_numbers=("NHWC", "HWIO", "NHWC"))
    y = y + b
    mean = jnp.mean(y, axis=(0, 1, 2), keepdims=True)
    var = jnp.mean((y - mean) ** 2, axis=(0, 1, 2), keepdims=True)
    y = (y - mean) / jnp.sqrt(var + EPS) * gamma + beta
    return jnp.maximum(y + residual, 0.0)


def res_block_reference(x_nchw, params):
    x = jnp.transpose(x_nchw, (0, 2, 3, 1))
    h = _ref_stage(x, params["w1"], params["b1"], params["g1"], params["beta1"],
                   jnp.zeros_like(x))
    o = _ref_stage(h, params["w2"], params["b2"], params["g2"], params["beta2"], x)
    return jnp.transpose(o, (0, 3, 1, 2))


def init_params(key, n_channels):
    ks = jax.random.split(key, 8)
    C = n_channels
    # PyTorch layout is (Cout, Cin, kH, kW); kernel/ref want HWIO (kH, kW, Cin, Cout).
    w1 = 0.2 * jax.random.normal(ks[0], (C, C, 3, 3), jnp.float32)
    w2 = 0.2 * jax.random.normal(ks[1], (C, C, 3, 3), jnp.float32)
    return {
        "w1": jnp.transpose(w1, (2, 3, 1, 0)),
        "b1": 0.1 * jax.random.normal(ks[2], (C,), jnp.float32),
        "g1": 1.0 + 0.1 * jax.random.normal(ks[3], (C,), jnp.float32),
        "beta1": 0.1 * jax.random.normal(ks[4], (C,), jnp.float32),
        "w2": jnp.transpose(w2, (2, 3, 1, 0)),
        "b2": 0.1 * jax.random.normal(ks[5], (C,), jnp.float32),
        "g2": 1.0 + 0.1 * jax.random.normal(ks[6], (C,), jnp.float32),
        "beta2": 0.1 * jax.random.normal(ks[7], (C,), jnp.float32),
    }


if __name__ == "__main__":
    key = jax.random.PRNGKey(0)
    k_x, k_p = jax.random.split(key)

    N, C, H, W = 2, 4, 16, 16
    x = jax.random.normal(k_x, (N, C, H, W), jnp.float32)
    params = init_params(k_p, C)

    out = jax.block_until_ready(jax.jit(res_block_forward)(x, params))
    ref = jax.block_until_ready(res_block_reference(x, params))

    assert out.shape == (N, C, H, W)
    assert jnp.allclose(out, ref, rtol=1e-4, atol=1e-4), float(jnp.max(jnp.abs(out - ref)))
    print("KERNEL_OK")
</pallas_src>

<mosaic_0001>
module attributes {stable_mosaic.version = 11 : i64} {
  func.func @_resblock_kernel(%arg0: memref<32x128xf32, #tpu.memory_space<vmem>>, %arg1: memref<32x1xf32, #tpu.memory_space<vmem>>, %arg2: memref<32x1xf32, #tpu.memory_space<vmem>>, %arg3: memref<3x128x128xf32, #tpu.memory_space<vmem>>, %arg4: memref<1x128xf32, #tpu.memory_space<vmem>>, %arg5: memref<1x128xf32, #tpu.memory_space<vmem>>, %arg6: memref<3x128x128xf32, #tpu.memory_space<vmem>>, %arg7: memref<1x128xf32, #tpu.memory_space<vmem>>, %arg8: memref<1x128xf32, #tpu.memory_space<vmem>>, %arg9: memref<128x128xf32, #tpu.memory_space<vmem>>, %arg10: memref<32x128xf32, #tpu.memory_space<vmem>>) attributes {dimension_semantics = [], scalar_prefetch = 0 : i64, scratch_operands = 0 : i64, tpu.core_type = #tpu.core_type<tc>} {
    %c0 = arith.constant 0 : index
    %c0_0 = arith.constant 0 : index
    %0 = vector.load %arg0[%c0, %c0_0] : memref<32x128xf32, #tpu.memory_space<vmem>>, vector<32x128xf32>
    %c0_1 = arith.constant 0 : index
    %c0_2 = arith.constant 0 : index
    %1 = vector.load %arg1[%c0_1, %c0_2] : memref<32x1xf32, #tpu.memory_space<vmem>>, vector<32x1xf32>
    %c0_3 = arith.constant 0 : index
    %c0_4 = arith.constant 0 : index
    %2 = vector.load %arg2[%c0_3, %c0_4] : memref<32x1xf32, #tpu.memory_space<vmem>>, vector<32x1xf32>
    %3 = tpu.iota {dimensions = array<i32: 0>} : vector<2x1xi32>
    %c1 = arith.constant 1 : index
    %c0_5 = arith.constant 0 : index
    %c0_6 = arith.constant 0 : index
    %4 = vector.load %arg3[%c1, %c0_5, %c0_6] : memref<3x128x128xf32, #tpu.memory_space<vmem>>, vector<1x128x128xf32>
    %5 = vector.shape_cast %4 : vector<1x128x128xf32> to vector<128x128xf32>
    %cst = arith.constant dense<0.000000e+00> : vector<32x128xf32>
    %6 = tpu.matmul %0, %5, %cst {dimension_numbers = #tpu.dot_dimension_numbers<[1], [0], [0], [1], [0, 0, 1, 1], [], []>} : vector<32x128xf32>, vector<128x128xf32>, vector<32x128xf32> -> vector<32x128xf32>
    %c1_i32 = arith.constant 1 : i32
    %7 = tpu.dynamic_rotate %0 by %c1_i32 dim 0 : vector<32x128xf32>, i32 -> vector<32x128xf32>
    %8 = vector.broadcast %1 : vector<32x1xf32> to vector<32x128xf32>
    %9 = arith.mulf %7, %8 : vector<32x128xf32>
    %c0_7 = arith.constant 0 : index
    %c0_8 = arith.constant 0 : index
    %c0_9 = arith.constant 0 : index
    %10 = vector.load %arg3[%c0_7, %c0_8, %c0_9] : memref<3x128x128xf32, #tpu.memory_space<vmem>>, vector<1x128x128xf32>
    %11 = vector.shape_cast %10 : vector<1x128x128xf32> to vector<128x128xf32>
    %cst_10 = arith.constant dense<0.000000e+00> : vector<32x128xf32>
    %12 = tpu.matmul %9, %11, %cst_10 {dimension_numbers = #tpu.dot_dimension_numbers<[1], [0], [0], [1], [0, 0, 1, 1], [], []>} : vector<32x128xf32>, vector<128x128xf32>, vector<32x128xf32> -> vector<32x128xf32>
    %13 = arith.addf %6, %12 : vector<32x128xf32>
    %c31_i32 = arith.constant 31 : i32
    %14 = tpu.dynamic_rotate %0 by %c31_i32 dim 0 : vector<32x128xf32>, i32 -> vector<32x128xf32>
    %15 = vector.broadcast %2 : vector<32x1xf32> to vector<32x128xf32>
    %16 = arith.mulf %14, %15 : vector<32x128xf32>
    %c2 = arith.constant 2 : index
    %c0_11 = arith.constant 0 : index
    %c0_12 = arith.constant 0 : index
    %17 = vector.load %arg3[%c2, %c0_11, %c0_12] : memref<3x128x128xf32, #tpu.memory_space<vmem>>, vector<1x128x128xf32>
    %18 = vector.shape_cast %17 : vector<1x128x128xf32> to vector<128x128xf32>
    %cst_13 = arith.constant dense<0.000000e+00> : vector<32x128xf32>
    %19 = tpu.matmul %16, %18, %cst_13 {dimension_numbers = #tpu.dot_dimension_numbers<[1], [0], [0], [1], [0, 0, 1, 1], [], []>} : vector<32x128xf32>, vector<128x128xf32>, vector<32x128xf32> -> vector<32x128xf32>
    %20 = arith.addf %13, %19 : vector<32x128xf32>
    %cst_14 = arith.constant dense<0.000000e+00> : vector<128xf32>
    %21 = vector.multi_reduction <add>, %20, %cst_14 [0] : vector<32x128xf32> to vector<128xf32>
    %22 = vector.shape_cast %21 : vector<128xf32> to vector<1x128xf32>
    %23 = arith.mulf %20, %20 : vector<32x128xf32>
    %cst_15 = arith.constant dense<0.000000e+00> : vector<128xf32>
    %24 = vector.multi_reduction <add>, %23, %cst_15 [0] : vector<32x128xf32> to vector<128xf32>
    %25 = vector.shape_cast %24 : vector<128xf32> to vector<1x128xf32>
    %c0_i32 = arith.constant 0 : i32
    %26 = vector.broadcast %c0_i32 : i32 to vector<2x1xi32>
    %27 = arith.cmpi eq, %3, %26 : vector<2x1xi32>
    %28 = vector.shape_cast %27 : vector<2x1xi1> to vector<2x1xi1>
    %29 = vector.broadcast %28 : vector<2x1xi1> to vector<2x128xi1>
    %30 = vector.shape_cast %22 : vector<1x128xf32> to vector<1x128xf32>
    %31 = vector.broadcast %30 : vector<1x128xf32> to vector<2x128xf32>
    %32 = vector.shape_cast %25 : vector<1x128xf32> to vector<1x128xf32>
    %33 = vector.broadcast %32 : vector<1x128xf32> to vector<2x128xf32>
    %34 = arith.select %29, %31, %33 : vector<2x128xi1>, vector<2x128xf32>
    %c0_16 = arith.constant 0 : index
    %c0_17 = arith.constant 0 : index
    %35 = vector.load %arg9[%c0_16, %c0_17] : memref<128x128xf32, #tpu.memory_space<vmem>>, vector<128x128xf32>
    %cst_18 = arith.constant dense<0.000000e+00> : vector<2x128xf32>
    %36 = tpu.matmul %34, %35, %cst_18 {dimension_numbers = #tpu.dot_dimension_numbers<[1], [0], [0], [1], [0, 0, 1, 1], [], []>} : vector<2x128xf32>, vector<128x128xf32>, vector<2x128xf32> -> vector<2x128xf32>
    %cst_19 = arith.constant 0.001953125 : f32
    %37 = vector.broadcast %cst_19 : f32 to vector<2x128xf32>
    %38 = arith.mulf %36, %37 : vector<2x128xf32>
    %39 = vector.extract_strided_slice %38 {offsets = [0, 0], sizes = [1, 128], strides = [1, 1]} : vector<2x128xf32> to vector<1x128xf32>
    %40 = vector.extract_strided_slice %38 {offsets = [1, 0], sizes = [1, 128], strides = [1, 1]} : vector<2x128xf32> to vector<1x128xf32>
    %41 = arith.mulf %39, %39 : vector<1x128xf32>
    %42 = arith.subf %40, %41 : vector<1x128xf32>
    %c0_20 = arith.constant 0 : index
    %c0_21 = arith.constant 0 : index
    %43 = vector.load %arg4[%c0_20, %c0_21] : memref<1x128xf32, #tpu.memory_space<vmem>>, vector<1x128xf32>
    %cst_22 = arith.constant 9.99999974E-6 : f32
    %44 = vector.broadcast %cst_22 : f32 to vector<1x128xf32>
    %45 = arith.addf %42, %44 : vector<1x128xf32>
    %46 = math.rsqrt %45 : vector<1x128xf32>
    %47 = arith.mulf %43, %46 : vector<1x128xf32>
    %c0_23 = arith.constant 0 : index
    %c0_24 = arith.constant 0 : index
    %48 = vector.load %arg5[%c0_23, %c0_24] : memref<1x128xf32, #tpu.memory_space<vmem>>, vector<1x128xf32>
    %49 = arith.mulf %39, %47 : vector<1x128xf32>
    %50 = arith.subf %48, %49 : vector<1x128xf32>
    %51 = vector.broadcast %47 : vector<1x128xf32> to vector<32x128xf32>
    %52 = arith.mulf %20, %51 : vector<32x128xf32>
    %53 = vector.broadcast %50 : vector<1x128xf32> to vector<32x128xf32>
    %54 = arith.addf %52, %53 : vector<32x128xf32>
    %cst_25 = arith.constant 0.000000e+00 : f32
    %55 = vector.broadcast %cst_25 : f32 to vector<32x128xf32>
    %56 = arith.maximumf %54, %55 : vector<32x128xf32>
    %c1_26 = arith.constant 1 : index
    %c0_27 = arith.constant 0 : index
    %c0_28 = arith.constant 0 : index
    %57 = vector.load %arg6[%c1_26, %c0_27, %c0_28] : memref<3x128x128xf32, #tpu.memory_space<vmem>>, vector<1x128x128xf32>
    %58 = vector.shape_cast %57 : vector<1x128x128xf32> to vector<128x128xf32>
    %cst_29 = arith.constant dense<0.000000e+00> : vector<32x128xf32>
    %59 = tpu.matmul %56, %58, %cst_29 {dimension_numbers = #tpu.dot_dimension_numbers<[1], [0], [0], [1], [0, 0, 1, 1], [], []>} : vector<32x128xf32>, vector<128x128xf32>, vector<32x128xf32> -> vector<32x128xf32>
    %c1_i32_30 = arith.constant 1 : i32
    %60 = tpu.dynamic_rotate %56 by %c1_i32_30 dim 0 : vector<32x128xf32>, i32 -> vector<32x128xf32>
    %61 = vector.broadcast %1 : vector<32x1xf32> to vector<32x128xf32>
    %62 = arith.mulf %60, %61 : vector<32x128xf32>
    %c0_31 = arith.constant 0 : index
    %c0_32 = arith.constant 0 : index
    %c0_33 = arith.constant 0 : index
    %63 = vector.load %arg6[%c0_31, %c0_32, %c0_33] : memref<3x128x128xf32, #tpu.memory_space<vmem>>, vector<1x128x128xf32>
    %64 = vector.shape_cast %63 : vector<1x128x128xf32> to vector<128x128xf32>
    %cst_34 = arith.constant dense<0.000000e+00> : vector<32x128xf32>
    %65 = tpu.matmul %62, %64, %cst_34 {dimension_numbers = #tpu.dot_dimension_numbers<[1], [0], [0], [1], [0, 0, 1, 1], [], []>} : vector<32x128xf32>, vector<128x128xf32>, vector<32x128xf32> -> vector<32x128xf32>
    %66 = arith.addf %59, %65 : vector<32x128xf32>
    %c31_i32_35 = arith.constant 31 : i32
    %67 = tpu.dynamic_rotate %56 by %c31_i32_35 dim 0 : vector<32x128xf32>, i32 -> vector<32x128xf32>
    %68 = vector.broadcast %2 : vector<32x1xf32> to vector<32x128xf32>
    %69 = arith.mulf %67, %68 : vector<32x128xf32>
    %c2_36 = arith.constant 2 : index
    %c0_37 = arith.constant 0 : index
    %c0_38 = arith.constant 0 : index
    %70 = vector.load %arg6[%c2_36, %c0_37, %c0_38] : memref<3x128x128xf32, #tpu.memory_space<vmem>>, vector<1x128x128xf32>
    %71 = vector.shape_cast %70 : vector<1x128x128xf32> to vector<128x128xf32>
    %cst_39 = arith.constant dense<0.000000e+00> : vector<32x128xf32>
    %72 = tpu.matmul %69, %71, %cst_39 {dimension_numbers = #tpu.dot_dimension_numbers<[1], [0], [0], [1], [0, 0, 1, 1], [], []>} : vector<32x128xf32>, vector<128x128xf32>, vector<32x128xf32> -> vector<32x128xf32>
    %73 = arith.addf %66, %72 : vector<32x128xf32>
    %cst_40 = arith.constant dense<0.000000e+00> : vector<128xf32>
    %74 = vector.multi_reduction <add>, %73, %cst_40 [0] : vector<32x128xf32> to vector<128xf32>
    %75 = vector.shape_cast %74 : vector<128xf32> to vector<1x128xf32>
    %76 = arith.mulf %73, %73 : vector<32x128xf32>
    %cst_41 = arith.constant dense<0.000000e+00> : vector<128xf32>
    %77 = vector.multi_reduction <add>, %76, %cst_41 [0] : vector<32x128xf32> to vector<128xf32>
    %78 = vector.shape_cast %77 : vector<128xf32> to vector<1x128xf32>
    %c0_i32_42 = arith.constant 0 : i32
    %79 = vector.broadcast %c0_i32_42 : i32 to vector<2x1xi32>
    %80 = arith.cmpi eq, %3, %79 : vector<2x1xi32>
    %81 = vector.shape_cast %80 : vector<2x1xi1> to vector<2x1xi1>
    %82 = vector.broadcast %81 : vector<2x1xi1> to vector<2x128xi1>
    %83 = vector.shape_cast %75 : vector<1x128xf32> to vector<1x128xf32>
    %84 = vector.broadcast %83 : vector<1x128xf32> to vector<2x128xf32>
    %85 = vector.shape_cast %78 : vector<1x128xf32> to vector<1x128xf32>
    %86 = vector.broadcast %85 : vector<1x128xf32> to vector<2x128xf32>
    %87 = arith.select %82, %84, %86 : vector<2x128xi1>, vector<2x128xf32>
    %c0_43 = arith.constant 0 : index
    %c0_44 = arith.constant 0 : index
    %88 = vector.load %arg9[%c0_43, %c0_44] : memref<128x128xf32, #tpu.memory_space<vmem>>, vector<128x128xf32>
    %cst_45 = arith.constant dense<0.000000e+00> : vector<2x128xf32>
    %89 = tpu.matmul %87, %88, %cst_45 {dimension_numbers = #tpu.dot_dimension_numbers<[1], [0], [0], [1], [0, 0, 1, 1], [], []>} : vector<2x128xf32>, vector<128x128xf32>, vector<2x128xf32> -> vector<2x128xf32>
    %cst_46 = arith.constant 0.001953125 : f32
    %90 = vector.broadcast %cst_46 : f32 to vector<2x128xf32>
    %91 = arith.mulf %89, %90 : vector<2x128xf32>
    %92 = vector.extract_strided_slice %91 {offsets = [0, 0], sizes = [1, 128], strides = [1, 1]} : vector<2x128xf32> to vector<1x128xf32>
    %93 = vector.extract_strided_slice %91 {offsets = [1, 0], sizes = [1, 128], strides = [1, 1]} : vector<2x128xf32> to vector<1x128xf32>
    %94 = arith.mulf %92, %92 : vector<1x128xf32>
    %95 = arith.subf %93, %94 : vector<1x128xf32>
    %c0_47 = arith.constant 0 : index
    %c0_48 = arith.constant 0 : index
    %96 = vector.load %arg7[%c0_47, %c0_48] : memref<1x128xf32, #tpu.memory_space<vmem>>, vector<1x128xf32>
    %cst_49 = arith.constant 9.99999974E-6 : f32
    %97 = vector.broadcast %cst_49 : f32 to vector<1x128xf32>
    %98 = arith.addf %95, %97 : vector<1x128xf32>
    %99 = math.rsqrt %98 : vector<1x128xf32>
    %100 = arith.mulf %96, %99 : vector<1x128xf32>
    %c0_50 = arith.constant 0 : index
    %c0_51 = arith.constant 0 : index
    %101 = vector.load %arg8[%c0_50, %c0_51] : memref<1x128xf32, #tpu.memory_space<vmem>>, vector<1x128xf32>
    %102 = arith.mulf %92, %100 : vector<1x128xf32>
    %103 = arith.subf %101, %102 : vector<1x128xf32>
    %104 = vector.broadcast %100 : vector<1x128xf32> to vector<32x128xf32>
    %105 = arith.mulf %73, %104 : vector<32x128xf32>
    %106 = vector.broadcast %103 : vector<1x128xf32> to vector<32x128xf32>
    %107 = arith.addf %105, %106 : vector<32x128xf32>
    %108 = arith.addf %107, %0 : vector<32x128xf32>
    %cst_52 = arith.constant 0.000000e+00 : f32
    %109 = vector.broadcast %cst_52 : f32 to vector<32x128xf32>
    %110 = arith.maximumf %108, %109 : vector<32x128xf32>
    %c0_53 = arith.constant 0 : index
    %c0_54 = arith.constant 0 : index
    %111 = vector.load %arg10[%c0_53, %c0_54] : memref<32x128xf32, #tpu.memory_space<vmem>>, vector<32x128xf32>
    tpu.vector_store %arg10[%c0_53, %c0_54], %110 {strides = array<i32>} : memref<32x128xf32, #tpu.memory_space<vmem>>, vector<32x128xf32>,
    return
  }
}

</mosaic_0001>

<bundles_post_ra>
// kernel: tile.23
= control target key start
LH: loop header
LB: loop body
LE: loop exit
PB: predicated region body
PF: predicated region fallthrough
CT: control target
= control target key end

     0   :  { %s28_s0 = inlined_call_operand.vmem [shape: f32[8], index: 0, kind: input, shape index: {}]   ;;  %s29_s1 = inlined_call_operand.vmem [shape: f32[16,8], index: 1, kind: output, shape index: {}]  }
   0x1   :  { %v4_v0 = vld [vmem:[%s28_s0] ss:$0 sm:$0xff] }
   0x2   :  { %5 = vst [vmem:[%s29_s1] sm:$0xff] %v4_v0  ;;  %8 = vst [vmem:[%s29_s1 + $0x8] sm:$0xff] %v4_v0 }

// kernel: tile.24
= control target key start
LH: loop header
LB: loop body
LE: loop exit
PB: predicated region body
PF: predicated region fallthrough
CT: control target
= control target key end

     0   :  { %s131_s10 = smov 120   ;;  %s132_s11 = smov 104   ;;  %vm3_vm0 = vcmask 64512   ;;  %vm9_vm1 = vcmask 1048512   ;;  %vm15_vm2 = vcmask 982912   ;;  %vm21_vm3 = vcmask 917312   ;;  %s207_s0 = inlined_call_operand.vmem [shape: f32[16,8], index: 0, kind: input, shape index: {}]   ;;  %s208_s1 = inlined_call_operand.vmem [shape: f32[1,128], index: 1, kind: output, shape index: {}]  }
   0x1   :  { %v101_v0 = vld [vmem:[%s207_s0 + $0xf] sm:$0x1]   ;;  %v103_v1 = vld [vmem:[%s207_s0 + $0xd] sm:$0x1]   ;;  %v102_v2 = vld [vmem:[%s207_s0 + $0xe] sm:$0x1]  }
   0x2   :  { %7 = vrot.lane.b32.xlu0 %v101_v0, %s131_s10  ;;  %19 = vrot.lane.b32.xlu1 %v103_v1, %s132_s11  ;;  %v104_v3 = vld [vmem:[%s207_s0 + $0xc] sm:$0x1]   ;;  %s133_s16 = smov 112   ;;  %s134_s17 = smov 96   ;;  %v105_v4 = vld [vmem:[%s207_s0 + $0xb] sm:$0x1]  }
   0x3   :  { %v106_v5 = vld [vmem:[%s207_s0 + $0xa] sm:$0x1]   ;;  %v2_v6 = vld [vmem:[%s207_s0] sm:$0x1]   ;;  %s135_s24 = smov 88   ;;  %s136_s25 = smov 80  }
   0x4   :  { %4 = vst.msk [vmem:[#allocation0] sm:$0x1] %vm3_vm0, %v2_v6   ;;  %v107_v7 = vld [vmem:[%s207_s0 + $0x9] sm:$0x1]   ;;  %v108_v8 = vld [vmem:[%s207_s0 + $0x8] sm:$0x1]  }
   0x5   :  { %s137_s30 = smov 72   ;;  %s138_s2 = smov 64   ;;  %v109_v9 = vld [vmem:[%s207_s0 + $0x7] sm:$0x1]   ;;  %v110_v10 = vld [vmem:[%s207_s0 + $0x6] sm:$0x1]  }
   0x6   :  { %13 = vrot.lane.b32.xlu0 %v102_v2, %s133_s16  ;;  %25 = vrot.lane.b32.xlu1 %v104_v3, %s134_s17  ;;  %s139_s7 = smov 56   ;;  %s140_s8 = smov 48   ;;  %v111_v11 = vld [vmem:[%s207_s0 + $0x5] sm:$0x1]   ;;  %v112_v12 = vld [vmem:[%s207_s0 + $0x4] sm:$0x1]  }
   0x7   :  { %s141_s13 = smov 40   ;;  %s142_s14 = smov 32   ;;  %v113_v13 = vld [vmem:[%s207_s0 + $0x3] sm:$0x1]   ;;  %v114_v14 = vld [vmem:[%s207_s0 + $0x2] sm:$0x1]  }
   0x8   :  { %s143_s19 = smov 24   ;;  %s144_s20 = smov 16   ;;  %v115_v15 = vld [vmem:[%s207_s0 + $0x1] sm:$0x1]   ;;  %vm27_vm4 = vcmask 851712   ;;  %vm33_vm5 = vcmask 786112  }
   0x9   :  { %s145_s0 = smov 8   ;;  %vm39_vm6 = vcmask 720512   ;;  %vm45_vm7 = vcmask 654912   ;;  %vm51_vm8 = vcmask 589312   ;;  %vm57_vm9 = vcmask 523712  }
   0xa   :  { %31 = vrot.lane.b32.xlu0 %v105_v4, %s135_s24  ;;  %37 = vrot.lane.b32.xlu1 %v106_v5, %s136_s25  ;;  %vm63_vm10 = vcmask 458112   ;;  %vm69_vm11 = vcmask 392512   ;;  %vm75_vm12 = vcmask 326912   ;;  %vm81_vm13 = vcmask 261312  }
   0xb   :  { %vm87_vm14 = vcmask 195712   ;;  %vm93_vm15 = vcmask 130112  }
   0xe   :  { %43 = vrot.lane.b32.xlu0 %v107_v7, %s137_s30  ;;  %49 = vrot.lane.b32.xlu1 %v108_v8, %s138_s2 }
  0x12   :  { %55 = vrot.lane.b32.xlu0 %v109_v9, %s139_s7  ;;  %61 = vrot.lane.b32.xlu1 %v110_v10, %s140_s8 }
  0x16   :  { %67 = vrot.lane.b32.xlu0 %v111_v11, %s141_s13  ;;  %73 = vrot.lane.b32.xlu1 %v112_v12, %s142_s14 }
  0x1a   :  { %79 = vrot.lane.b32.xlu0 %v113_v13, %s143_s19  ;;  %85 = vrot.lane.b32.xlu1 %v114_v14, %s144_s20 }
  0x1e   :  { %91 = vrot.lane.b32.xlu0 %v115_v15, %s145_s0 }
  0x74   :  { %v8_v16 = vpop.permute.xlu0 %7   ;;  %v20_v17 = vpop.permute.xlu1 %19  }
  0x75   :  { %10 = vst.msk [vmem:[#allocation0] sm:$0x1] %vm9_vm1, %v8_v16  }
  0x78   :  { %v14_v18 = vpop.permute.xlu0 %13   ;;  %v26_v19 = vpop.permute.xlu1 %25  }
  0x79   :  { %16 = vst.msk [vmem:[#allocation0] sm:$0x1] %vm15_vm2, %v14_v18  }
  0x7a   :  { %22 = vst.msk [vmem:[#allocation0] sm:$0x1] %vm21_vm3, %v20_v17  }
  0x7b   :  { %28 = vst.msk [vmem:[#allocation0] sm:$0x1] %vm27_vm4, %v26_v19  }
  0x7c   :  { %v32_v20 = vpop.permute.xlu0 %31   ;;  %v38_v21 = vpop.permute.xlu1 %37  }
  0x7d   :  { %34 = vst.msk [vmem:[#allocation0] sm:$0x1] %vm33_vm5, %v32_v20  }
  0x7e   :  { %40 = vst.msk [vmem:[#allocation0] sm:$0x1] %vm39_vm6, %v38_v21  }
  0x80   :  { %v44_v22 = vpop.permute.xlu0 %43   ;;  %v50_v23 = vpop.permute.xlu1 %49  }
  0x81   :  { %46 = vst.msk [vmem:[#allocation0] sm:$0x1] %vm45_vm7, %v44_v22  }
  0x82   :  { %52 = vst.msk [vmem:[#allocation0] sm:$0x1] %vm51_vm8, %v50_v23  }
  0x84   :  { %v56_v24 = vpop.permute.xlu0 %55   ;;  %v62_v25 = vpop.permute.xlu1 %61  }
  0x85   :  { %58 = vst.msk [vmem:[#allocation0] sm:$0x1] %vm57_vm9, %v56_v24  }
  0x86   :  { %64 = vst.msk [vmem:[#allocation0] sm:$0x1] %vm63_vm10, %v62_v25  }
  0x88   :  { %v68_v26 = vpop.permute.xlu0 %67   ;;  %v74_v27 = vpop.permute.xlu1 %73  }
  0x89   :  { %70 = vst.msk [vmem:[#allocation0] sm:$0x1] %vm69_vm11, %v68_v26  }
  0x8a   :  { %76 = vst.msk [vmem:[#allocation0] sm:$0x1] %vm75_vm12, %v74_v27  }
  0x8c   :  { %v80_v28 = vpop.permute.xlu0 %79   ;;  %v86_v29 = vpop.permute.xlu1 %85  }
  0x8d   :  { %82 = vst.msk [vmem:[#allocation0] sm:$0x1] %vm81_vm13, %v80_v28  }
  0x8e   :  { %88 = vst.msk [vmem:[#allocation0] sm:$0x1] %vm87_vm14, %v86_v29  }
  0x90   :  { %v92_v30 = vpop.permute.xlu0 %91  }
  0x91   :  { %94 = vst.msk [vmem:[#allocation0] sm:$0x1] %vm93_vm15, %v92_v30  }
  0x98   :  { %v98_v31 = vld [vmem:[#allocation0] sm:$0x1] }
  0x99   :  { %100 = vst [vmem:[%s208_s1] sm:$0x1] %v98_v31 }

// kernel: res_block_forward.1
= control target key start
LH: loop header
LB: loop body
LE: loop exit
PB: predicated region body
PF: predicated region fallthrough
CT: control target
= control target key end

     0   :  { %v1865_v0 = vmov 0   ;;  %v1866_v36 = vmov 0.0|0.0   ;;  %v47_v43 = vlaneseq  ;;  %vm1867_vm2 = vmmov 0   ;;  %s2508_s1 = inlined_call_operand.vmem [shape: f32[32,1], index: 1, kind: input, shape index: {}]   ;;  %s2509_s3 = inlined_call_operand.vmem [shape: f32[3,128,128], index: 3, kind: input, shape index: {}]   ;;  %s2510_s2 = inlined_call_operand.vmem [shape: f32[32,1], index: 2, kind: input, shape index: {}]   ;;  %s2511_s9 = inlined_call_operand.vmem [shape: f32[128,128], index: 9, kind: input, shape index: {}]   ;;  %s2512_s0 = inlined_call_operand.vmem [shape: f32[32,128], index: 0, kind: input, shape index: {}]   ;;  %s2513_s6 = inlined_call_operand.vmem [shape: f32[3,128,128], index: 6, kind: input, shape index: {}]   ;;  %s2514_s4 = inlined_call_operand.vmem [shape: f32[1,128], index: 4, kind: input, shape index: {}]   ;;  %s2515_s5 = inlined_call_operand.vmem [shape: f32[1,128], index: 5, kind: input, shape index: {}]   ;;  %s2516_s7 = inlined_call_operand.vmem [shape: f32[1,128], index: 7, kind: input, shape index: {}]   ;;  %s2517_s8 = inlined_call_operand.vmem [shape: f32[1,128], index: 8, kind: input, shape index: {}]   ;;  %s2518_s10 = inlined_call_operand.vmem [shape: f32[32,128], index: 10, kind: output, shape index: {}]  }
   0x1   :  { %1859 = vset.pattern.permute.xlu0 %v1865_v0  ;;  %v39_v1 = vld [vmem:[%s2508_s1] sm:$0xff]  ;;  %1860 = vset.pattern.permute.xlu1 %v1865_v0  ;;  %v41_v2 = vld [vmem:[%s2508_s1 + $0x10] sm:$0xff]  ;;  %v40_v3 = vld [vmem:[%s2508_s1 + $0x8] sm:$0xff] }
   0x2   :  { %77 = vperm.xlu0 %1859, %v39_v1   ;;  %87 = vperm.xlu1 %1860, %v41_v2   ;;  %v42_v4 = vld [vmem:[%s2508_s1 + $0x18] sm:$0xff]  ;;  %v99_v5 = vld [vmem:[%s2509_s3] sm:$0xff]  ;;  %v100_v6 = vld [vmem:[%s2509_s3 + $0x8] sm:$0xff]  ;;  %v2034_v46 = vshrl.u32 %v47_v43, 7 }
   0x3   :  { %v101_v7 = vld [vmem:[%s2509_s3 + $0x10] sm:$0xff]  ;;  %v102_v8 = vld [vmem:[%s2509_s3 + $0x18] sm:$0xff]  ;;  %v1598_v9 = vpack.c.bf16 %v100_v6, %v99_v5  ;;  %v103_v11 = vld [vmem:[%s2509_s3 + $0x20] sm:$0xff]  ;;  %1694 = vmatprep.subr.bf16.mxu1 %v1866_v36 }
   0x4   :  { %v1602_v10 = vpack.c.bf16 %v102_v8, %v101_v7  ;;  %v104_v12 = vld [vmem:[%s2509_s3 + $0x28] sm:$0xff]  ;;  %v43_v13 = vld [vmem:[%s2510_s2] sm:$0xff]  ;;  %v105_v16 = vld [vmem:[%s2509_s3 + $0x30] sm:$0xff]  ;;  %vm70_vm0 = vcmp.lt.s32.totalorder %v2034_v46, 1  ;;  %vm289_vm1 = vcmp.lt.s32.totalorder %v2034_v46, 7  ;;  %vm446_vm3 = vcmp.eq.s32.totalorder %v2034_v46, 0 }
   0x5   :  { %1599 = vmatprep.subr.bf16.mxu0 %v1598_v9  ;;  %v44_v14 = vld [vmem:[%s2510_s2 + $0x8] sm:$0xff]  ;;  %v1606_v15 = vpack.c.bf16 %v104_v12, %v103_v11  ;;  %v106_v17 = vld [vmem:[%s2509_s3 + $0x38] sm:$0xff]  ;;  %v45_v18 = vld [vmem:[%s2510_s2 + $0x10] sm:$0xff] }
   0x6   :  { %82 = vperm.xlu0 %1859, %v40_v3   ;;  %92 = vperm.xlu1 %1860, %v42_v4   ;;  %v46_v19 = vld [vmem:[%s2510_s2 + $0x18] sm:$0xff]  ;;  %v1610_v20 = vpack.c.bf16 %v106_v17, %v105_v16  ;;  %v107_v21 = vld [vmem:[%s2509_s3 + $0x40] sm:$0xff]  ;;  %v108_v22 = vld [vmem:[%s2509_s3 + $0x48] sm:$0xff] }
   0x7   :  { %1601 = vmatpush3.bf16.msra.mxu0 %v1598_v9  ;;  %v1614_v23 = vpack.c.bf16 %v108_v22, %v107_v21  ;;  %v109_v24 = vld [vmem:[%s2509_s3 + $0x50] sm:$0xff]  ;;  %v110_v25 = vld [vmem:[%s2509_s3 + $0x58] sm:$0xff]  ;;  %v111_v27 = vld [vmem:[%s2509_s3 + $0x60] sm:$0xff] }
   0x8   :  { %1603 = vmatprep.subr.bf16.mxu0 %v1602_v10  ;;  %v1618_v26 = vpack.c.bf16 %v110_v25, %v109_v24  ;;  %v112_v28 = vld [vmem:[%s2509_s3 + $0x68] sm:$0xff]  ;;  %v113_v30 = vld [vmem:[%s2509_s3 + $0x70] sm:$0xff]  ;;  %v114_v31 = vld [vmem:[%s2509_s3 + $0x78] sm:$0xff] }
   0x9   :  { %v1622_v29 = vpack.c.bf16 %v112_v28, %v111_v27  ;;  %v1626_v32 = vpack.c.bf16 %v114_v31, %v113_v30  ;;  %v1082_v33 = vld [vmem:[%s2509_s3 + $0x80] sm:$0xff]  ;;  %v1083_v34 = vld [vmem:[%s2509_s3 + $0x88] sm:$0xff]  ;;  %v452_v39 = vld [vmem:[%s2511_s9 + $0x10] sm:$0xff] }
   0xa   :  { %296 = vperm.xlu0 %1859, %v43_v13   ;;  %301 = vperm.xlu1 %1860, %v44_v14   ;;  %v1630_v35 = vpack.c.bf16 %v1083_v34, %v1082_v33  ;;  %v450_v37 = vld [vmem:[%s2511_s9] sm:$0xff]  ;;  %v451_v38 = vld [vmem:[%s2511_s9 + $0x8] sm:$0xff]  ;;  %v453_v41 = vld [vmem:[%s2511_s9 + $0x18] sm:$0xff] }
   0xb   :  { %1605 = vmatpush3.bf16.msra.mxu0 %v1602_v10  ;;  %v2013_v40 = vpack.c.bf16 %v451_v38, %v450_v37  ;;  %v2019_v42 = vpack.c.bf16 %v453_v41, %v452_v39  ;;  %v2027_v44 = vld [vmem:[%s2512_s0] sm:$0xff]  ;;  %v2032_v45 = vld [vmem:[%s2512_s0 + $0x18] sm:$0xff]  ;;  %v2042_v49 = vld [vmem:[%s2512_s0 + $0x8] sm:$0xff] }
   0xc   :  { %1607 = vmatprep.subr.bf16.mxu0 %v1606_v15  ;;  %v66_v47 = vrot.slane %v2027_v44, 7  ;;  %v69_v48 = vrot.slane %v2032_v45, 7  ;;  %v2047_v50 = vld [vmem:[%s2512_s0 + $0x10] sm:$0xff]  ;;  %v67_v53 = vrot.slane %v2042_v49, 7  ;;  %v1085_v60 = vld [vmem:[%s2509_s3 + $0x98] sm:$0xff]  ;;  %v1086_v2 = vld [vmem:[%s2509_s3 + $0xa0] sm:$0xff] }
   0xd   :  { %1696 = vmatpush3.bf16.msra.mxu1 %v2013_v40  ;;  %v68_v51 = vrot.slane %v2047_v50, 7  ;;  %v1084_v59 = vld [vmem:[%s2509_s3 + $0x90] sm:$0xff]  ;;  %v1087_v3 = vld [vmem:[%s2509_s3 + $0xa8] sm:$0xff]  ;;  %v1089_v8 = vld [vmem:[%s2509_s3 + $0xb8] sm:$0xff]  ;;  %v285_v27 = vrot.slane %v2027_v44, 1  ;;  %v286_v28 = vrot.slane %v2042_v49, 1 }
   0xe   :  { %306 = vperm.xlu0 %1859, %v45_v18   ;;  %311 = vperm.xlu1 %1860, %v46_v19   ;;  %v74_v52 = vsel %vm70_vm0, %v69_v48, %v66_v47  ;;  %v73_v58 = vsel %vm70_vm0, %v66_v47, %v67_v53  ;;  %v1634_v1 = vpack.c.bf16 %v1085_v60, %v1084_v59  ;;  %v1088_v7 = vld [vmem:[%s2509_s3 + $0xb0] sm:$0xff]  ;;  %v1090_v10 = vld [vmem:[%s2509_s3 + $0xc0] sm:$0xff]  ;;  %v1091_v11 = vld [vmem:[%s2509_s3 + $0xc8] sm:$0xff] }
   0xf   :  { %1609 = vmatpush3.bf16.msra.mxu0 %v1606_v15  ;;  %1697 = vmatprep.subr.bf16.mxu1 %v1866_v36  ;;  %v72_v57 = vsel %vm70_vm0, %v67_v53, %v68_v51  ;;  %v71_v63 = vsel %vm70_vm0, %v68_v51, %v69_v48  ;;  %v1638_v6 = vpack.c.bf16 %v1087_v3, %v1086_v2  ;;  %v1092_v13 = vld [vmem:[%s2509_s3 + $0xd0] sm:$0xff]  ;;  %v1093_v14 = vld [vmem:[%s2509_s3 + $0xd8] sm:$0xff]  ;;  %v1094_v16 = vld [vmem:[%s2509_s3 + $0xe0] sm:$0xff] }
  0x10   :  { %1611 = vmatprep.subr.bf16.mxu0 %v1610_v20  ;;  %v1642_v9 = vpack.c.bf16 %v1089_v8, %v1088_v7  ;;  %v1646_v12 = vpack.c.bf16 %v1091_v11, %v1090_v10  ;;  %v1650_v15 = vpack.c.bf16 %v1093_v14, %v1092_v13  ;;  %v1095_v17 = vld [vmem:[%s2509_s3 + $0xe8] sm:$0xff]  ;;  %v1096_v19 = vld [vmem:[%s2509_s3 + $0xf0] sm:$0xff]  ;;  %v1098_v22 = vld [vmem:[%s2509_s3 + $0x100] sm:$0xff]  ;;  %v292_v33 = vsel %vm289_vm1, %v285_v27, %v286_v28 }
  0x11   :  { %1699 = vmatpush3.bf16.msra.mxu1 %v2019_v42  ;;  %v1654_v18 = vpack.c.bf16 %v1095_v17, %v1094_v16  ;;  %v1100_v25 = vld [vmem:[%s2509_s3 + $0x110] sm:$0xff]  ;;  %v1102_v30 = vld [vmem:[%s2509_s3 + $0x120] sm:$0xff]  ;;  %v1103_v31 = vld [vmem:[%s2509_s3 + $0x128] sm:$0xff] }
  0x12   :  { %1700 = vmatprep.subr.bf16.mxu1 %v1866_v36  ;;  %v1670_v34 = vpack.c.bf16 %v1103_v31, %v1102_v30  ;;  %v1104_v37 = vld [vmem:[%s2509_s3 + $0x130] sm:$0xff]  ;;  %v1105_v38 = vld [vmem:[%s2509_s3 + $0x138] sm:$0xff]  ;;  %v1106_v41 = vld [vmem:[%s2509_s3 + $0x140] sm:$0xff] }
  0x13   :  { %1613 = vmatpush3.bf16.msra.mxu0 %v1610_v20  ;;  %v1097_v20 = vld [vmem:[%s2509_s3 + $0xf8] sm:$0xff]  ;;  %v1674_v39 = vpack.c.bf16 %v1105_v38, %v1104_v37  ;;  %v1107_v43 = vld [vmem:[%s2509_s3 + $0x148] sm:$0xff]  ;;  %v1108_v48 = vld [vmem:[%s2509_s3 + $0x150] sm:$0xff] }
  0x14   :  { %1615 = vmatprep.subr.bf16.mxu0 %v1614_v23  ;;  %v1658_v21 = vpack.c.bf16 %v1097_v20, %v1096_v19  ;;  %v1678_v47 = vpack.c.bf16 %v1107_v43, %v1106_v41  ;;  %v1109_v51 = vld [vmem:[%s2509_s3 + $0x158] sm:$0xff]  ;;  %v1110_v53 = vld [vmem:[%s2509_s3 + $0x160] sm:$0xff]  ;;  %v455_v11 = vld [vmem:[%s2511_s9 + $0x28] sm:$0xff] }
  0x15   :  { %v1113_v59 = vld [vmem:[%s2509_s3 + $0x178] sm:$0xff]  ;;  %v454_v10 = vld [vmem:[%s2511_s9 + $0x20] sm:$0xff]  ;;  %v460_v17 = vld [vmem:[%s2511_s9 + $0x50] sm:$0xff] }
  0x16   :  { %v458_v14 = vld [vmem:[%s2511_s9 + $0x40] sm:$0xff] }
  0x17   :  { %1617 = vmatpush3.bf16.msra.mxu0 %v1614_v23  ;;  %v1099_v23 = vld [vmem:[%s2509_s3 + $0x108] sm:$0xff]  ;;  %v462_v20 = vld [vmem:[%s2511_s9 + $0x60] sm:$0xff] }
  0x18   :  { %1619 = vmatprep.subr.bf16.mxu0 %v1618_v26  ;;  %v1662_v24 = vpack.c.bf16 %v1099_v23, %v1098_v22  ;;  %v464_v23 = vld [vmem:[%s2511_s9 + $0x70] sm:$0xff] }
  0x1b   :  { %1621 = vmatpush3.bf16.msra.mxu0 %v1618_v26  ;;  %v1101_v26 = vld [vmem:[%s2509_s3 + $0x118] sm:$0xff] }
  0x1c   :  { %1623 = vmatprep.subr.bf16.mxu0 %v1622_v29 }
  0x1f   :  { %1625 = vmatpush3.bf16.msra.mxu0 %v1622_v29  ;;  %v1666_v29 = vpack.c.bf16 %v1101_v26, %v1100_v25  ;;  %v1868_v25 = vmov 0.0  }
  0x20   :  { %1627 = vmatprep.subr.bf16.mxu0 %v1626_v32  ;;  %1446 = vmatprep.mubr.msk.f32.mxu1 %vm1867_vm2, %v1868_v25 }
  0x23   :  { %1629 = vmatpush3.bf16.msra.mxu0 %v1626_v32 }
  0x24   :  { %1631 = vmatprep.subr.bf16.mxu0 %v1630_v35 }
  0x81   :  { %v2053_v54 = vpop.permute.xlu0 %77  ;;  %v2056_v56 = vpop.permute.xlu1 %87 }
  0x82   :  { %v95_v55 = vmul.f32 %v2053_v54, %v74_v52  ;;  %v97_v62 = vmul.f32 %v2056_v56, %v72_v57  ;;  %v1682_v52 = vpack.c.bf16 %v1109_v51, %v1108_v48 }
  0x84   :  { %1332 = vmatprep.mubr.f32.mxu0 %v95_v55  ;;  %v1111_v55 = vld [vmem:[%s2509_s3 + $0x168] sm:$0xff] }
  0x85   :  { %v2068_v61 = vpop.permute.xlu0 %82  ;;  %v2080_v4 = vpop.permute.xlu1 %92  ;;  %v1686_v57 = vpack.c.bf16 %v1111_v55, %v1110_v53 }
  0x86   :  { %v96_v0 = vmul.f32 %v2068_v61, %v73_v58  ;;  %v98_v5 = vmul.f32 %v2080_v4, %v71_v63  ;;  %v1112_v58 = vld [vmem:[%s2509_s3 + $0x170] sm:$0xff]  ;;  %v288_v63 = vrot.slane %v2032_v45, 1 }
  0x87   :  { %v1690_v60 = vpack.c.bf16 %v1113_v59, %v1112_v58 }
  0x88   :  { %1333 = vmatmul.mubr.f32.vlgmr.msra.gmra.mrb[0].mxu0 %v96_v0  ;;  %v293_v8 = vsel %vm289_vm1, %v288_v63, %v285_v27 }
  0x89   :  { %1633 = vmatpush3.bf16.msra.mxu0 %v1630_v35  ;;  %1335 = vmatprep.mubr.f32.mxu0 %v97_v62  ;;  %v2135_v32 = vpop.permute.xlu0 %296  ;;  %v287_v62 = vrot.slane %v2047_v50, 1  ;;  %v2175_v0 = vpop.permute.xlu1 %301 }
  0x8a   :  { %1635 = vmatprep.subr.bf16.mxu0 %v1634_v1  ;;  %v314_v35 = vmul.f32 %v2135_v32, %v292_v33 }
  0x8b   :  { %v290_v3 = vsel %vm289_vm1, %v287_v62, %v288_v63 }
  0x8c   :  { %1336 = vmatmul.mubr.f32.gmra.mrb[2].mxu0 %v98_v5 }
  0x8d   :  { %1637 = vmatpush3.bf16.msra.mxu0 %v1634_v1  ;;  %1370 = vmatprep.mubr.f32.mxu0 %v2027_v44  ;;  %v291_v1 = vsel %vm289_vm1, %v286_v28, %v287_v62  ;;  %v2179_v2 = vpop.permute.xlu0 %306  ;;  %v2186_v7 = vpop.permute.xlu1 %311 }
  0x8e   :  { %1639 = vmatprep.subr.bf16.mxu0 %v1638_v6  ;;  %v315_v5 = vmul.f32 %v2175_v0, %v291_v1 }
  0x91   :  { %1641 = vmatpush3.bf16.msra.mxu0 %v1638_v6  ;;  %v316_v6 = vmul.f32 %v2179_v2, %v290_v3  ;;  %v619_v3 = vld [vmem:[%s2513_s6] sm:$0xff] }
  0x92   :  { %1643 = vmatprep.subr.bf16.mxu0 %v1642_v9 }
  0x95   :  { %1645 = vmatpush3.bf16.msra.mxu0 %v1642_v9  ;;  %v317_v9 = vmul.f32 %v2186_v7, %v293_v8  ;;  %v621_v8 = vld [vmem:[%s2513_s6 + $0x10] sm:$0xff] }
  0x96   :  { %1647 = vmatprep.subr.bf16.mxu0 %v1646_v12 }
  0x99   :  { %1649 = vmatpush3.bf16.msra.mxu0 %v1646_v12  ;;  %v1701_v12 = vpack.c.bf16 %v455_v11, %v454_v10  ;;  %v623_v11 = vld [vmem:[%s2513_s6 + $0x20] sm:$0xff] }
  0x9a   :  { %1651 = vmatprep.subr.bf16.mxu0 %v1650_v15 }
  0x9b   :  { %1702 = vmatpush3.bf16.msra.mxu1 %v1701_v12 }
  0x9c   :  { %1703 = vmatprep.subr.bf16.mxu1 %v1866_v36 }
  0x9d   :  { %1653 = vmatpush3.bf16.msra.mxu0 %v1650_v15  ;;  %v459_v15 = vld [vmem:[%s2511_s9 + $0x48] sm:$0xff] }
  0x9e   :  { %1655 = vmatprep.subr.bf16.mxu0 %v1654_v18  ;;  %v1707_v16 = vpack.c.bf16 %v459_v15, %v458_v14  ;;  %v627_v15 = vld [vmem:[%s2513_s6 + $0x40] sm:$0xff] }
  0xa1   :  { %1657 = vmatpush3.bf16.msra.mxu0 %v1654_v18  ;;  %v461_v18 = vld [vmem:[%s2511_s9 + $0x58] sm:$0xff] }
  0xa2   :  { %1659 = vmatprep.subr.bf16.mxu0 %v1658_v21  ;;  %v1710_v19 = vpack.c.bf16 %v461_v18, %v460_v17  ;;  %v629_v18 = vld [vmem:[%s2513_s6 + $0x50] sm:$0xff] }
  0xa5   :  { %1661 = vmatpush3.bf16.msra.mxu0 %v1658_v21  ;;  %v463_v21 = vld [vmem:[%s2511_s9 + $0x68] sm:$0xff] }
  0xa6   :  { %1663 = vmatprep.subr.bf16.mxu0 %v1662_v24  ;;  %v1713_v22 = vpack.c.bf16 %v463_v21, %v462_v20  ;;  %v631_v21 = vld [vmem:[%s2513_s6 + $0x60] sm:$0xff] }
  0xa8   :  { %1371 = vmatmul.mubr.f32.vlgmr.msra.gmra.mrb[0].mxu0 %v2042_v49 }
  0xa9   :  { %1665 = vmatpush3.bf16.msra.mxu0 %v1662_v24  ;;  %1373 = vmatprep.mubr.f32.mxu0 %v2047_v50  ;;  %v465_v24 = vld [vmem:[%s2511_s9 + $0x78] sm:$0xff] }
  0xaa   :  { %1667 = vmatprep.subr.bf16.mxu0 %v1666_v29  ;;  %v1716_v26 = vpack.c.bf16 %v465_v24, %v464_v23  ;;  %v633_v24 = vld [vmem:[%s2513_s6 + $0x70] sm:$0xff] }
  0xac   :  { %1374 = vmatmul.mubr.f32.gmra.mrb[2].mxu0 %v2032_v45 }
  0xad   :  { %1669 = vmatpush3.bf16.msra.mxu0 %v1666_v29  ;;  %1408 = vmatprep.mubr.f32.mxu0 %v314_v35 }
  0xae   :  { %1671 = vmatprep.subr.bf16.mxu0 %v1670_v34 }
  0xb1   :  { %1673 = vmatpush3.bf16.msra.mxu0 %v1670_v34 }
  0xb2   :  { %1675 = vmatprep.subr.bf16.mxu0 %v1674_v39 }
  0xb5   :  { %1677 = vmatpush3.bf16.msra.mxu0 %v1674_v39 }
  0xb6   :  { %1679 = vmatprep.subr.bf16.mxu0 %v1678_v47 }
  0xb9   :  { %1681 = vmatpush3.bf16.msra.mxu0 %v1678_v47 }
  0xba   :  { %1683 = vmatprep.subr.bf16.mxu0 %v1682_v52 }
  0xbd   :  { %1685 = vmatpush3.bf16.msra.mxu0 %v1682_v52 }
  0xbe   :  { %1687 = vmatprep.subr.bf16.mxu0 %v1686_v57 }
  0xc1   :  { %1689 = vmatpush3.bf16.msra.mxu0 %v1686_v57 }
  0xc2   :  { %1691 = vmatprep.subr.bf16.mxu0 %v1690_v60 }
  0xc5   :  { %1693 = vmatpush3.bf16.msra.mxu0 %v1690_v60 }
  0xc6   :  { %1814 = vmatprep.subr.bf16.mxu0 %v1866_v36 }
  0xc8   :  { %1409 = vmatmul.mubr.f32.vlgmr.msra.gmra.mrb[0].mxu0 %v315_v5  ;;  %v620_v5 = vld [vmem:[%s2513_s6 + $0x8] sm:$0xff] }
  0xc9   :  { %1411 = vmatprep.mubr.f32.mxu0 %v316_v6  ;;  %1816 = vmatpush3.bf16.msra.mxu0 %v2013_v40  ;;  %v456_v40 = vld [vmem:[%s2511_s9 + $0x30] sm:$0xff]  ;;  %v1718_v6 = vpack.c.bf16 %v620_v5, %v619_v3 }
  0xca   :  { %1817 = vmatprep.subr.bf16.mxu0 %v1866_v36 }
  0xcc   :  { %1412 = vmatmul.mubr.f32.gmra.mrb[2].mxu0 %v317_v9  ;;  %v622_v9 = vld [vmem:[%s2513_s6 + $0x18] sm:$0xff] }
  0xcd   :  { %1819 = vmatpush3.bf16.msra.mxu0 %v2019_v42  ;;  %v457_v42 = vld [vmem:[%s2511_s9 + $0x38] sm:$0xff]  ;;  %1595 = vmatprep.mubr.msk.f32.mxu0 %vm1867_vm2, %v1868_v25  ;;  %v1722_v10 = vpack.c.bf16 %v622_v9, %v621_v8 }
  0xce   :  { %1820 = vmatprep.subr.bf16.mxu0 %v1866_v36  ;;  %v1704_v13 = vpack.c.bf16 %v457_v42, %v456_v40  ;;  %v625_v42 = vld [vmem:[%s2513_s6 + $0x30] sm:$0xff]  ;;  %v634_v25 = vld [vmem:[%s2513_s6 + $0x78] sm:$0xff] }
  0xd0   :  { %1705 = vmatpush3.bf16.msra.mxu1 %v1704_v13 }
  0xd1   :  { %1822 = vmatpush3.bf16.msra.mxu0 %v1701_v12  ;;  %1706 = vmatprep.subr.bf16.mxu1 %v1866_v36  ;;  %v624_v12 = vld [vmem:[%s2513_s6 + $0x28] sm:$0xff] }
  0xd2   :  { %1823 = vmatprep.subr.bf16.mxu0 %v1866_v36  ;;  %v1726_v40 = vpack.c.bf16 %v624_v12, %v623_v11 }
  0xd4   :  { %1708 = vmatpush3.bf16.msra.mxu1 %v1707_v16 }
  0xd5   :  { %1825 = vmatpush3.bf16.msra.mxu0 %v1704_v13  ;;  %1709 = vmatprep.subr.bf16.mxu1 %v1866_v36  ;;  %v626_v13 = vld [vmem:[%s2513_s6 + $0x38] sm:$0xff] }
  0xd6   :  { %1826 = vmatprep.subr.bf16.mxu0 %v1866_v36  ;;  %v1730_v14 = vpack.c.bf16 %v626_v13, %v625_v42 }
  0xd8   :  { %1711 = vmatpush3.bf16.msra.mxu1 %v1710_v19 }
  0xd9   :  { %1828 = vmatpush3.bf16.msra.mxu0 %v1707_v16  ;;  %1712 = vmatprep.subr.bf16.mxu1 %v1866_v36  ;;  %v628_v16 = vld [vmem:[%s2513_s6 + $0x48] sm:$0xff] }
  0xda   :  { %1829 = vmatprep.subr.bf16.mxu0 %v1866_v36  ;;  %v1734_v17 = vpack.c.bf16 %v628_v16, %v627_v15 }
  0xdc   :  { %1714 = vmatpush3.bf16.msra.mxu1 %v1713_v22 }
  0xdd   :  { %1831 = vmatpush3.bf16.msra.mxu0 %v1710_v19  ;;  %1715 = vmatprep.subr.bf16.mxu1 %v1866_v36  ;;  %v630_v19 = vld [vmem:[%s2513_s6 + $0x58] sm:$0xff] }
  0xde   :  { %1832 = vmatprep.subr.bf16.mxu0 %v1866_v36  ;;  %v1738_v20 = vpack.c.bf16 %v630_v19, %v629_v18  ;;  %v1116_v18 = vld [vmem:[%s2513_s6 + $0x90] sm:$0xff]  ;;  %v1117_v19 = vld [vmem:[%s2513_s6 + $0x98] sm:$0xff] }
  0xe0   :  { %1717 = vmatpush3.bf16.msra.mxu1 %v1716_v26 }
  0xe1   :  { %1834 = vmatpush3.bf16.msra.mxu0 %v1713_v22  ;;  %1719 = vmatprep.subr.bf16.mxu1 %v1718_v6  ;;  %v632_v22 = vld [vmem:[%s2513_s6 + $0x68] sm:$0xff] }
  0xe2   :  { %1835 = vmatprep.subr.bf16.mxu0 %v1866_v36  ;;  %v1742_v23 = vpack.c.bf16 %v632_v22, %v631_v21 }
  0xe5   :  { %1837 = vmatpush3.bf16.msra.mxu0 %v1716_v26  ;;  %v1746_v26 = vpack.c.bf16 %v634_v25, %v633_v24 }
 0x19b   :  { %v2241_v27 = vpop.f32.mrb[0].mxu0 }
 0x19c   :  { %v434_v28 = vmul.f32 %v2241_v27, %v2241_v27  ;;  %v2245_v29 = vpop.f32.mrb[1].mxu0 }
 0x19d   :  { %v424_v30 = vadd.f32 %v2241_v27, %v2245_v29  ;;  %v433_v31 = vmul.f32 %v2245_v29, %v2245_v29 }
 0x19f   :  { %v437_v33 = vadd.f32 %v434_v28, %v433_v31  ;;  %v2251_v34 = vpop.f32.mrb[2].mxu0  ;;  %v1114_v28 = vld [vmem:[%s2513_s6 + $0x80] sm:$0xff] }
 0x1a0   :  { %v2253_v35 = vpop.f32.mrb[3].mxu0  ;;  %v436_v38 = vmul.f32 %v2251_v34, %v2251_v34 }
 0x1a1   :  { %v425_v36 = vadd.f32 %v424_v30, %v2253_v35  ;;  %v435_v37 = vmul.f32 %v2253_v35, %v2253_v35  ;;  %v1115_v30 = vld [vmem:[%s2513_s6 + $0x88] sm:$0xff] }
 0x1a2   :  { %v2318_v31 = vpack.c.bf16 %v1115_v30, %v1114_v28 }
 0x1a3   :  { %v426_v39 = vadd.f32 %v2251_v34, %v425_v36  ;;  %v438_v41 = vadd.f32 %v437_v33, %v435_v37 }
 0x1a5   :  { %v427_v43 = vrot.slane %v426_v39, 4  ;;  %v439_v47 = vadd.f32 %v438_v41, %v436_v38 }
 0x1a7   :  { %v428_v48 = vadd.f32 %v427_v43, %v426_v39  ;;  %v440_v51 = vrot.slane %v439_v47, 4 }
 0x1a9   :  { %v429_v52 = vrot.slane %v428_v48, 2  ;;  %v441_v53 = vadd.f32 %v440_v51, %v439_v47  ;;  %v1869_v47 = vmov 1966171168  }
 0x1ab   :  { %v430_v55 = vadd.f32 %v429_v52, %v428_v48  ;;  %v442_v57 = vrot.slane %v441_v53, 2  ;;  %v547_v48 = vunpack.c.l.s4 %v1869_v47 }
 0x1ad   :  { %v431_v58 = vrot.slane %v430_v55, 1  ;;  %v443_v59 = vadd.f32 %v442_v57, %v441_v53  ;;  %v548_v51 = vunpack.c.0.s8 %v547_v48 }
 0x1af   :  { %v444_v60 = vrot.slane %v443_v59, 1  ;;  %v432_v62 = vadd.f32 %v431_v58, %v430_v55  ;;  %v2322_v52 = vsub.s32 %v548_v51, %v2034_v46  ;;  %v542_v58 = vld [vmem:[%s2514_s4] sm:$0x1]  ;;  %v1121_v51 = vld [vmem:[%s2513_s6 + $0xb8] sm:$0xff] }
 0x1b1   :  { %v445_v63 = vadd.f32 %v444_v60, %v443_v59  ;;  %v2330_v60 = vsub.s32 0, %v2034_v46 }
 0x1b3   :  { %v449_v1 = vsel %vm446_vm3, %v432_v62, %v445_v63  ;;  %v563_v63 = vld [vmem:[%s2515_s5] sm:$0x1] }
 0x1b4   :  { %1447 = vmatmul.mubr.f32.vlgmr.msra.gmra.mrb[0].mxu1 %v449_v1 }
 0x1b5   :  { %1721 = vmatpush3.bf16.msra.mxu1 %v1718_v6 }
 0x1b6   :  { %1723 = vmatprep.subr.bf16.mxu1 %v1722_v10 }
 0x1b9   :  { %1725 = vmatpush3.bf16.msra.mxu1 %v1722_v10 }
 0x1ba   :  { %1727 = vmatprep.subr.bf16.mxu1 %v1726_v40 }
 0x1bd   :  { %1729 = vmatpush3.bf16.msra.mxu1 %v1726_v40 }
 0x1be   :  { %1731 = vmatprep.subr.bf16.mxu1 %v1730_v14 }
 0x1c1   :  { %1733 = vmatpush3.bf16.msra.mxu1 %v1730_v14 }
 0x1c2   :  { %1735 = vmatprep.subr.bf16.mxu1 %v1734_v17 }
 0x1c5   :  { %1737 = vmatpush3.bf16.msra.mxu1 %v1734_v17 }
 0x1c6   :  { %1739 = vmatprep.subr.bf16.mxu1 %v1738_v20 }
 0x1c9   :  { %1741 = vmatpush3.bf16.msra.mxu1 %v1738_v20 }
 0x1ca   :  { %1743 = vmatprep.subr.bf16.mxu1 %v1742_v23 }
 0x1cd   :  { %1745 = vmatpush3.bf16.msra.mxu1 %v1742_v23 }
 0x1ce   :  { %1747 = vmatprep.subr.bf16.mxu1 %v1746_v26 }
 0x1d1   :  { %1749 = vmatpush3.bf16.msra.mxu1 %v1746_v26 }
 0x1d2   :  { %1751 = vmatprep.subr.bf16.mxu1 %v2318_v31 }
 0x287   :  { %v532_v33 = vpop.f32.mrb[0].mxu1 }
 0x288   :  { %v536_v36 = vmul.f32 0.001953125, %v532_v33  ;;  %v1448_v37 = vpop.f32.mrb[1].mxu1 }
 0x28a   :  { %v537_v38 = vmul.f32 %v536_v36, %v536_v36 }
 0x28c   :  { %v539_v39 = vrot.slane %v537_v38, 7 }
 0x28e   :  { %v541_v41 = vsub.f32 %v536_v36, %v539_v39 }
 0x290   :  { %v543_v43 = vadd.f32 1e-05, %v541_v41 }
 0x292   :  { %1861 = vrsqrt.f32 %v543_v43  ;;  %v1119_v43 = vld [vmem:[%s2513_s6 + $0xa8] sm:$0xff] }
 0x29c   :  { %v1862_v53 = vpop.eup %1861 }
 0x29d   :  { %v552_v55 = vrot.slane %v1862_v53, %v2322_v52 }
 0x29f   :  { %v553_v57 = vcombine.high %v552_v55, %v552_v55 }
 0x2a1   :  { %v560_v59 = vrot.slane %v553_v57, %v2322_v52  ;;  %v1124_v57 = vld [vmem:[%s2513_s6 + $0xd0] sm:$0xff] }
 0x2a3   :  { %v562_v62 = vmul.f32 %v560_v59, %v542_v58  ;;  %v1125_v58 = vld [vmem:[%s2513_s6 + $0xd8] sm:$0xff] }
 0x2a4   :  { %v1770_v59 = vpack.c.bf16 %v1125_v58, %v1124_v57 }
 0x2a5   :  { %v564_v1 = vmul.f32 %v562_v62, %v536_v36  ;;  %v570_v3 = vrot.slane %v562_v62, %v2330_v60  ;;  %v1754_v36 = vpack.c.bf16 %v1117_v19, %v1116_v18  ;;  %v1126_v62 = vld [vmem:[%s2513_s6 + $0xe0] sm:$0xff]  ;;  %v1140_v18 = vld [vmem:[%s2513_s6 + $0x150] sm:$0xff] }
 0x2a7   :  { %v565_v5 = vsub.f32 %v563_v63, %v564_v1  ;;  %v573_v6 = vmul.f32 %v2241_v27, %v570_v3  ;;  %v572_v8 = vmul.f32 %v570_v3, %v2245_v29  ;;  %v575_v9 = vmul.f32 %v2251_v34, %v570_v3  ;;  %v1127_v63 = vld [vmem:[%s2513_s6 + $0xe8] sm:$0xff] }
 0x2a8   :  { %v574_v10 = vmul.f32 %v570_v3, %v2253_v35  ;;  %v1774_v1 = vpack.c.bf16 %v1127_v63, %v1126_v62  ;;  %v1128_v3 = vld [vmem:[%s2513_s6 + $0xf0] sm:$0xff] }
 0x2a9   :  { %v580_v11 = vrot.slane %v565_v5, %v2330_v60  ;;  %v1129_v5 = vld [vmem:[%s2513_s6 + $0xf8] sm:$0xff] }
 0x2ab   :  { %v583_v12 = vadd.f32 %v580_v11, %v573_v6  ;;  %v582_v40 = vadd.f32 %v580_v11, %v572_v8  ;;  %v585_v42 = vadd.f32 %v580_v11, %v575_v9  ;;  %v584_v13 = vadd.f32 %v580_v11, %v574_v10  ;;  %v1130_v8 = vld [vmem:[%s2513_s6 + $0x100] sm:$0xff]  ;;  %v1131_v9 = vld [vmem:[%s2513_s6 + $0x108] sm:$0xff]  ;;  %v1132_v11 = vld [vmem:[%s2513_s6 + $0x110] sm:$0xff] }
 0x2ac   :  { %v1778_v6 = vpack.c.bf16 %v1129_v5, %v1128_v3  ;;  %v1782_v10 = vpack.c.bf16 %v1131_v9, %v1130_v8 }
 0x2ad   :  { %v586_v14 = vmax.f32 %v582_v40, 0.0  ;;  %v2341_v15 = vmax.f32 %v585_v42, 0.0  ;;  %v2343_v16 = vmax.f32 %v583_v12, 0.0  ;;  %v2345_v17 = vmax.f32 %v584_v13, 0.0  ;;  %v1133_v12 = vld [vmem:[%s2513_s6 + $0x118] sm:$0xff]  ;;  %v1134_v42 = vld [vmem:[%s2513_s6 + $0x120] sm:$0xff] }
 0x2ae   :  { %v1786_v40 = vpack.c.bf16 %v1133_v12, %v1132_v11  ;;  %v1135_v13 = vld [vmem:[%s2513_s6 + $0x128] sm:$0xff] }
 0x2af   :  { %v607_v27 = vrot.slane %v586_v14, 7  ;;  %v610_v29 = vrot.slane %v2341_v15, 7  ;;  %v608_v34 = vrot.slane %v2343_v16, 7  ;;  %v609_v35 = vrot.slane %v2345_v17, 7 }
 0x2b0   :  { %v805_v20 = vrot.slane %v586_v14, 1  ;;  %v806_v21 = vrot.slane %v2343_v16, 1  ;;  %v807_v22 = vrot.slane %v2345_v17, 1  ;;  %v808_v23 = vrot.slane %v2341_v15, 1 }
 0x2b1   :  { %v614_v24 = vsel %vm70_vm0, %v610_v29, %v607_v27  ;;  %v613_v25 = vsel %vm70_vm0, %v607_v27, %v608_v34  ;;  %v612_v26 = vsel %vm70_vm0, %v608_v34, %v609_v35  ;;  %v611_v28 = vsel %vm70_vm0, %v609_v35, %v610_v29  ;;  %v1136_v29 = vld [vmem:[%s2513_s6 + $0x130] sm:$0xff]  ;;  %v1137_v34 = vld [vmem:[%s2513_s6 + $0x138] sm:$0xff] }
 0x2b2   :  { %v615_v30 = vmul.f32 %v614_v24, %v2053_v54  ;;  %v616_v33 = vmul.f32 %v613_v25, %v2068_v61  ;;  %v811_v37 = vsel %vm289_vm1, %v805_v20, %v806_v21  ;;  %v2373_v38 = vsel %vm289_vm1, %v806_v21, %v807_v22  ;;  %v1118_v61 = vld [vmem:[%s2513_s6 + $0xa0] sm:$0xff]  ;;  %v1143_v21 = vld [vmem:[%s2513_s6 + $0x168] sm:$0xff]  ;;  %v1145_v24 = vld [vmem:[%s2513_s6 + $0x178] sm:$0xff] }
 0x2b3   :  { %v2377_v39 = vsel %vm289_vm1, %v807_v22, %v808_v23  ;;  %v2381_v41 = vsel %vm289_vm1, %v808_v23, %v805_v20  ;;  %v617_v54 = vmul.f32 %v612_v26, %v2056_v56  ;;  %v618_v47 = vmul.f32 %v611_v28, %v2080_v4  ;;  %v1120_v56 = vld [vmem:[%s2513_s6 + $0xb0] sm:$0xff]  ;;  %v1123_v4 = vld [vmem:[%s2513_s6 + $0xc8] sm:$0xff]  ;;  %v1142_v20 = vld [vmem:[%s2513_s6 + $0x160] sm:$0xff] }
 0x2b4   :  { %1481 = vmatprep.mubr.f32.mxu1 %v615_v30  ;;  %v1758_v48 = vpack.c.bf16 %v1119_v43, %v1118_v61  ;;  %v1762_v53 = vpack.c.bf16 %v1121_v51, %v1120_v56  ;;  %v813_v27 = vmul.f32 %v811_v37, %v2135_v32  ;;  %v1139_v32 = vld [vmem:[%s2513_s6 + $0x148] sm:$0xff]  ;;  %v1806_v22 = vpack.c.bf16 %v1143_v21, %v1142_v20  ;;  %v1144_v23 = vld [vmem:[%s2513_s6 + $0x170] sm:$0xff] }
 0x2b5   :  { %1482 = vmatmul.mubr.f32.vlgmr.msra.gmra.mrb[2].mxu1 %v616_v33  ;;  %v1810_v25 = vpack.c.bf16 %v1145_v24, %v1144_v23  ;;  %v814_v26 = vmul.f32 %v2373_v38, %v2175_v0  ;;  %v815_v28 = vmul.f32 %v2377_v39, %v2179_v2  ;;  %v816_v30 = vmul.f32 %v2381_v41, %v2186_v7 }
 0x2b6   :  { %1753 = vmatpush3.bf16.msra.mxu1 %v2318_v31  ;;  %1484 = vmatprep.mubr.f32.mxu1 %v617_v54  ;;  %v1122_v31 = vld [vmem:[%s2513_s6 + $0xc0] sm:$0xff] }
 0x2b7   :  { %1755 = vmatprep.subr.bf16.mxu1 %v1754_v36  ;;  %v1766_v55 = vpack.c.bf16 %v1123_v4, %v1122_v31 }
 0x2b9   :  { %1485 = vmatmul.mubr.f32.gmra.mrb[4].mxu1 %v618_v47 }
 0x2ba   :  { %1757 = vmatpush3.bf16.msra.mxu1 %v1754_v36  ;;  %1519 = vmatprep.mubr.f32.mxu1 %v586_v14  ;;  %v1790_v14 = vpack.c.bf16 %v1135_v13, %v1134_v42 }
 0x2bb   :  { %1759 = vmatprep.subr.bf16.mxu1 %v1758_v48 }
 0x2be   :  { %1761 = vmatpush3.bf16.msra.mxu1 %v1758_v48 }
 0x2bf   :  { %1763 = vmatprep.subr.bf16.mxu1 %v1762_v53 }
 0x2c2   :  { %1765 = vmatpush3.bf16.msra.mxu1 %v1762_v53 }
 0x2c3   :  { %1767 = vmatprep.subr.bf16.mxu1 %v1766_v55 }
 0x2c6   :  { %1769 = vmatpush3.bf16.msra.mxu1 %v1766_v55 }
 0x2c7   :  { %1771 = vmatprep.subr.bf16.mxu1 %v1770_v59 }
 0x2ca   :  { %1773 = vmatpush3.bf16.msra.mxu1 %v1770_v59 }
 0x2cb   :  { %1775 = vmatprep.subr.bf16.mxu1 %v1774_v1 }
 0x2ce   :  { %1777 = vmatpush3.bf16.msra.mxu1 %v1774_v1 }
 0x2cf   :  { %1779 = vmatprep.subr.bf16.mxu1 %v1778_v6 }
 0x2d2   :  { %1781 = vmatpush3.bf16.msra.mxu1 %v1778_v6 }
 0x2d3   :  { %1783 = vmatprep.subr.bf16.mxu1 %v1782_v10 }
 0x2d5   :  { %1520 = vmatmul.mubr.f32.vlgmr.msra.gmra.mrb[2].mxu1 %v2343_v16  ;;  %v1794_v16 = vpack.c.bf16 %v1137_v34, %v1136_v29  ;;  %v1043_v29 = vld [vmem:[%s2517_s8] sm:$0x1] }
 0x2d6   :  { %1522 = vmatprep.mubr.f32.mxu1 %v2345_v17  ;;  %1785 = vmatpush3.bf16.msra.mxu1 %v1782_v10  ;;  %v1138_v17 = vld [vmem:[%s2513_s6 + $0x140] sm:$0xff] }
 0x2d7   :  { %1787 = vmatprep.subr.bf16.mxu1 %v1786_v40  ;;  %v1798_v35 = vpack.c.bf16 %v1139_v32, %v1138_v17 }
 0x2d9   :  { %1523 = vmatmul.mubr.f32.gmra.mrb[4].mxu1 %v2341_v15  ;;  %v1141_v15 = vld [vmem:[%s2513_s6 + $0x158] sm:$0xff] }
 0x2da   :  { %1789 = vmatpush3.bf16.msra.mxu1 %v1786_v40  ;;  %1557 = vmatprep.mubr.f32.mxu1 %v813_v27  ;;  %v1802_v19 = vpack.c.bf16 %v1141_v15, %v1140_v18 }
 0x2db   :  { %1791 = vmatprep.subr.bf16.mxu1 %v1790_v14 }
 0x2de   :  { %1793 = vmatpush3.bf16.msra.mxu1 %v1790_v14  ;;  %v1022_v14 = vld [vmem:[%s2516_s7] sm:$0x1] }
 0x2df   :  { %1795 = vmatprep.subr.bf16.mxu1 %v1794_v16 }
 0x2e2   :  { %1797 = vmatpush3.bf16.msra.mxu1 %v1794_v16 }
 0x2e3   :  { %1799 = vmatprep.subr.bf16.mxu1 %v1798_v35 }
 0x2e6   :  { %1801 = vmatpush3.bf16.msra.mxu1 %v1798_v35 }
 0x2e7   :  { %1803 = vmatprep.subr.bf16.mxu1 %v1802_v19 }
 0x2ea   :  { %1805 = vmatpush3.bf16.msra.mxu1 %v1802_v19 }
 0x2eb   :  { %1807 = vmatprep.subr.bf16.mxu1 %v1806_v22 }
 0x2ee   :  { %1809 = vmatpush3.bf16.msra.mxu1 %v1806_v22 }
 0x2ef   :  { %1811 = vmatprep.subr.bf16.mxu1 %v1810_v25 }
 0x2f2   :  { %1813 = vmatpush3.bf16.msra.mxu1 %v1810_v25 }
 0x2f5   :  { %1558 = vmatmul.mubr.f32.vlgmr.msra.gmra.mrb[2].mxu1 %v814_v26 }
 0x2f6   :  { %1560 = vmatprep.mubr.f32.mxu1 %v815_v28 }
 0x2f9   :  { %1561 = vmatmul.mubr.f32.gmra.mrb[4].mxu1 %v816_v30 }
 0x3c8   :  { %v1559_v33 = vpop.f32.mrb[2].mxu1 }
 0x3c9   :  { %v933_v36 = vmul.f32 %v1559_v33, %v1559_v33  ;;  %v900_v37 = vpop.f32.mrb[3].mxu1 }
 0x3ca   :  { %v923_v54 = vadd.f32 %v1559_v33, %v900_v37  ;;  %v932_v61 = vmul.f32 %v900_v37, %v900_v37 }
 0x3cc   :  { %v936_v43 = vadd.f32 %v933_v36, %v932_v61  ;;  %v1562_v47 = vpop.f32.mrb[4].mxu1 }
 0x3cd   :  { %v910_v48 = vpop.f32.mrb[5].mxu1  ;;  %v935_v0 = vmul.f32 %v1562_v47, %v1562_v47 }
 0x3ce   :  { %v924_v56 = vadd.f32 %v923_v54, %v910_v48  ;;  %v934_v51 = vmul.f32 %v910_v48, %v910_v48 }
 0x3d0   :  { %v925_v38 = vadd.f32 %v1562_v47, %v924_v56  ;;  %v937_v53 = vadd.f32 %v936_v43, %v934_v51 }
 0x3d2   :  { %v926_v2 = vrot.slane %v925_v38, 4  ;;  %v938_v39 = vadd.f32 %v937_v53, %v935_v0 }
 0x3d4   :  { %v927_v31 = vadd.f32 %v926_v2, %v925_v38  ;;  %v939_v4 = vrot.slane %v938_v39, 4 }
 0x3d6   :  { %v928_v55 = vrot.slane %v927_v31, 2  ;;  %v940_v7 = vadd.f32 %v939_v4, %v938_v39 }
 0x3d8   :  { %v929_v41 = vadd.f32 %v928_v55, %v927_v31  ;;  %v941_v57 = vrot.slane %v940_v7, 2 }
 0x3da   :  { %v930_v58 = vrot.slane %v929_v41, 1  ;;  %v942_v59 = vadd.f32 %v941_v57, %v940_v7 }
 0x3dc   :  { %v943_v62 = vrot.slane %v942_v59, 1  ;;  %v931_v63 = vadd.f32 %v930_v58, %v929_v41 }
 0x3de   :  { %v944_v1 = vadd.f32 %v943_v62, %v942_v59 }
 0x3e0   :  { %v945_v3 = vsel %vm446_vm3, %v931_v63, %v944_v1 }
 0x3e1   :  { %1596 = vmatmul.mubr.f32.vlgmr.msra.gmra.mrb[4].mxu0 %v945_v3 }
 0x4b4   :  { %v1012_v5 = vpop.f32.mrb[4].mxu0 }
 0x4b5   :  { %v1016_v6 = vmul.f32 0.001953125, %v1012_v5  ;;  %v1597_v8 = vpop.f32.mrb[5].mxu0 }
 0x4b7   :  { %v1017_v9 = vmul.f32 %v1016_v6, %v1016_v6 }
 0x4b9   :  { %v1019_v10 = vrot.slane %v1017_v9, 7 }
 0x4bb   :  { %v1021_v11 = vsub.f32 %v1016_v6, %v1019_v10 }
 0x4bd   :  { %v1023_v12 = vadd.f32 1e-05, %v1021_v11 }
 0x4bf   :  { %1863 = vrsqrt.f32 %v1023_v12 }
 0x4c9   :  { %v1864_v40 = vpop.eup %1863 }
 0x4ca   :  { %v1032_v42 = vrot.slane %v1864_v40, %v2322_v52 }
 0x4cc   :  { %v1033_v13 = vcombine.high %v1032_v42, %v1032_v42 }
 0x4ce   :  { %v1040_v46 = vrot.slane %v1033_v13, %v2322_v52 }
 0x4d0   :  { %v1042_v27 = vmul.f32 %v1040_v46, %v1022_v14 }
 0x4d2   :  { %v1044_v34 = vmul.f32 %v1042_v27, %v1016_v6  ;;  %v1050_v16 = vrot.slane %v1042_v27, %v2330_v60 }
 0x4d4   :  { %v1045_v17 = vsub.f32 %v1043_v29, %v1044_v34  ;;  %v1052_v32 = vmul.f32 %v1050_v16, %v900_v37  ;;  %v1053_v35 = vmul.f32 %v1559_v33, %v1050_v16  ;;  %v1054_v18 = vmul.f32 %v1050_v16, %v910_v48 }
 0x4d5   :  { %v1055_v15 = vmul.f32 %v1562_v47, %v1050_v16 }
 0x4d6   :  { %v1060_v19 = vrot.slane %v1045_v17, %v2330_v60 }
 0x4d8   :  { %v1062_v20 = vadd.f32 %v1060_v19, %v1052_v32  ;;  %v1063_v21 = vadd.f32 %v1060_v19, %v1053_v35  ;;  %v1064_v22 = vadd.f32 %v1060_v19, %v1054_v18  ;;  %v1065_v23 = vadd.f32 %v1060_v19, %v1055_v15 }
 0x4da   :  { %v1066_v52 = vadd.f32 %v1062_v20, %v2027_v44  ;;  %v1067_v24 = vadd.f32 %v1063_v21, %v2042_v49  ;;  %v1068_v25 = vadd.f32 %v1064_v22, %v2047_v50  ;;  %v1069_v26 = vadd.f32 %v1065_v23, %v2032_v45 }
 0x4dc   :  { %v1070_v28 = vmax.f32 %v1066_v52, 0.0  ;;  %v1071_v30 = vmax.f32 %v1067_v24, 0.0  ;;  %v1072_v36 = vmax.f32 %v1068_v25, 0.0  ;;  %v1073_v33 = vmax.f32 %v1069_v26, 0.0 }
 0x4de   :  { %1074 = vst [vmem:[%s2518_s10] sm:$0xff] %v1070_v28  ;;  %1075 = vst [vmem:[%s2518_s10 + $0x8] sm:$0xff] %v1071_v30 }
 0x4df   :  { %1076 = vst [vmem:[%s2518_s10 + $0x10] sm:$0xff] %v1072_v36  ;;  %1077 = vst [vmem:[%s2518_s10 + $0x18] sm:$0xff] %v1073_v33 }

</bundles_post_ra>
